<compile_context>
chip_gen: v7x
topology: tpu7x:2x2x1
jax: 0.10.0
libtpu: 0.0.40
codegen_flags: <defaults>
</compile_context>

<pallas_src>
import functools

import jax
import jax.numpy as jnp
from jax import lax
from jax.experimental import pallas as pl
from jax.experimental.pallas import tpu as pltpu


def _round_up(x, m):
    return ((x + m - 1) // m) * m


# ---------------------------------------------------------------------------
# Pallas kernel: tiled  (patches @ W_folded) + bias [+ residual] [ReLU]
# Grid = (M_tiles, N_tiles, K_tiles), K last ("arbitrary"); f32 VMEM acc.
# ---------------------------------------------------------------------------
def _fused_matmul_bn_kernel(*refs, relu, has_residual):
    if has_residual:
        p_ref, w_ref, b_ref, r_ref, o_ref, acc_ref = refs
    else:
        p_ref, w_ref, b_ref, o_ref, acc_ref = refs
        r_ref = None

    k = pl.program_id(2)

    @pl.when(k == 0)
    def _init():
        acc_ref[...] = jnp.zeros_like(acc_ref)

    # bf16 x bf16 -> f32 on the native MXU path.
    acc_ref[...] += jnp.dot(
        p_ref[...], w_ref[...], preferred_element_type=jnp.float32
    )

    @pl.when(k == pl.num_programs(2) - 1)
    def _finalize():
        out = acc_ref[...] + b_ref[...]          # BN scale already folded into W
        if r_ref is not None:
            out = out + r_ref[...].astype(jnp.float32)
        if relu:
            out = jnp.maximum(out, 0.0)
        o_ref[...] = out.astype(o_ref.dtype)


def _fused_conv_matmul(patches, w2d, bias, *, relu, residual=None,
                       out_dtype=jnp.bfloat16):
    """patches: (M, K), w2d: (K, C) with BN scale folded in, bias: (C,).

    Returns (M, C) in `out_dtype`.  Operands are padded to MXU/lane-aligned
    tiles and fed to the MXU as bf16 with f32 accumulation.
    """
    M, K = patches.shape
    C = w2d.shape[1]

    # Tile geometry: lane-dense N (multiple of 128), K tiles up to 512,
    # M tiles up to 256 (multiples of 16 for bf16 sublane packing).
    TN = 128
    TM = min(256, _round_up(M, 16))
    TK = min(512, _round_up(K, 128))
    Mp = _round_up(M, TM)
    Kp = _round_up(K, TK)
    Cp = _round_up(C, TN)

    p = jnp.pad(patches.astype(jnp.bfloat16), ((0, Mp - M), (0, Kp - K)))
    w = jnp.pad(w2d.astype(jnp.bfloat16), ((0, Kp - K), (0, Cp - C)))
    b = jnp.pad(bias.astype(jnp.float32), (0, Cp - C)).reshape(1, Cp)

    operands = [p, w, b]
    in_specs = [
        pl.BlockSpec((TM, TK), lambda i, j, k: (i, k)),
        pl.BlockSpec((TK, TN), lambda i, j, k: (k, j)),
        pl.BlockSpec((1, TN), lambda i, j, k: (0, j)),   # shared across M/K steps
    ]
    has_residual = residual is not None
    if has_residual:
        r = jnp.pad(residual.astype(jnp.bfloat16), ((0, Mp - M), (0, Cp - C)))
        operands.append(r)
        in_specs.append(pl.BlockSpec((TM, TN), lambda i, j, k: (i, j)))

    kernel = functools.partial(
        _fused_matmul_bn_kernel, relu=relu, has_residual=has_residual
    )
    out = pl.pallas_call(
        kernel,
        out_shape=jax.ShapeDtypeStruct((Mp, Cp), out_dtype),
        grid=(Mp // TM, Cp // TN, Kp // TK),
        in_specs=in_specs,
        out_specs=pl.BlockSpec((TM, TN), lambda i, j, k: (i, j)),
        scratch_shapes=[pltpu.VMEM((TM, TN), jnp.float32)],
        compiler_params=pltpu.CompilerParams(
            dimension_semantics=("parallel", "parallel", "arbitrary"),
            vmem_limit_bytes=32 * 1024 * 1024,
        ),
    )(*operands)
    return out[:M, :C]


# ---------------------------------------------------------------------------
# Glue: im2col for 3x3 conv with padding=1, given stride (plain JAX, bf16)
# ---------------------------------------------------------------------------
def _im2col_3x3(x_nhwc, stride):
    N, H, W, C = x_nhwc.shape
    Ho = (H + 2 - 3) // stride + 1
    Wo = (W + 2 - 3) // stride + 1
    xp = jnp.pad(x_nhwc, ((0, 0), (1, 1), (1, 1), (0, 0)))
    cols = []
    for kh in range(3):
        for kw in range(3):
            cols.append(
                xp[:, kh: kh + stride * (Ho - 1) + 1: stride,
                       kw: kw + stride * (Wo - 1) + 1: stride, :]
            )
    patches = jnp.concatenate(cols, axis=-1)  # (N, Ho, Wo, 9*C), order (kh,kw,ci)
    return patches.reshape(N * Ho * Wo, 9 * C), (N, Ho, Wo)


# ---------------------------------------------------------------------------
# Parameter init (deterministic, synthetic) — BN folded into (scale, bias),
# scale then folded into the conv weights.
# ---------------------------------------------------------------------------
def _bn_params(key, c, eps=1e-5):
    k1, k2, k3, k4 = jax.random.split(key, 4)
    gamma = 1.0 + 0.1 * jax.random.normal(k1, (c,), jnp.float32)
    beta = 0.1 * jax.random.normal(k2, (c,), jnp.float32)
    mean = 0.1 * jax.random.normal(k3, (c,), jnp.float32)
    var = jax.random.uniform(k4, (c,), jnp.float32, minval=0.5, maxval=1.5)
    scale = gamma * lax.rsqrt(var + eps)
    bias = beta - mean * scale
    return scale, bias


def _conv_weight(key, kh, kw, cin, cout):
    fan_in = kh * kw * cin
    return jax.random.normal(key, (kh, kw, cin, cout), jnp.float32) * jnp.sqrt(
        2.0 / fan_in
    )


class BasicBlockPallas:
    """Pallas implementation of the PyTorch BasicBlock forward pass."""

    def __init__(self, key, in_planes, out_planes, stride=1):
        self.in_planes = in_planes
        self.out_planes = out_planes
        self.stride = stride
        self.has_proj = (stride != 1) or (in_planes != out_planes)

        keys = jax.random.split(key, 6)
        w1 = _conv_weight(keys[0], 3, 3, in_planes, out_planes)        # HWIO
        s1, self.b1 = _bn_params(keys[1], out_planes)
        w2 = _conv_weight(keys[2], 3, 3, out_planes, out_planes)       # HWIO
        s2, self.b2 = _bn_params(keys[3], out_planes)
        # Fold BN scale into the conv weights (kernel epilogue is acc + bias).
        self.w1f = w1 * s1
        self.w2f = w2 * s2
        if self.has_proj:
            wsc = _conv_weight(keys[4], 1, 1, in_planes, out_planes)   # HWIO
            ssc, self.bsc = _bn_params(keys[5], out_planes)
            self.wscf = wsc * ssc

    # ---------------- Pallas forward ----------------
    def __call__(self, x_nchw):
        # NCHW -> NHWC, bf16 activations (MXU-native, half the HBM traffic).
        x = jnp.transpose(x_nchw, (0, 2, 3, 1)).astype(jnp.bfloat16)
        N = x.shape[0]

        # conv1 (3x3, stride) + bn1 + relu
        p1, (_, Ho, Wo) = _im2col_3x3(x, self.stride)
        out1_flat = _fused_conv_matmul(
            p1, self.w1f.reshape(-1, self.out_planes), self.b1,
            relu=True, out_dtype=jnp.bfloat16,
        )
        out1 = out1_flat.reshape(N, Ho, Wo, self.out_planes)

        # conv2 patches (3x3, stride 1)
        p2, _ = _im2col_3x3(out1, 1)

        if self.has_proj:
            # Fuse the 1x1 projection shortcut into conv2's matmul by
            # concatenating along K: out = [p2 | xs] @ [[W2];[Wsc]] + (b2+bsc).
            # Removes one pallas_call and the shortcut HBM round-trip.
            xs = x[:, :: self.stride, :: self.stride, :].reshape(
                N * Ho * Wo, self.in_planes
            )
            p_cat = jnp.concatenate([p2, xs], axis=1)
            w_cat = jnp.concatenate(
                [self.w2f.reshape(-1, self.out_planes),
                 self.wscf.reshape(self.in_planes, self.out_planes)], axis=0
            )
            b_cat = self.b2 + self.bsc
            out_flat = _fused_conv_matmul(
                p_cat, w_cat, b_cat, relu=True, out_dtype=jnp.float32,
            )
        else:
            # Identity shortcut: added in the kernel epilogue.
            sc_flat = x.reshape(N * Ho * Wo, self.out_planes)
            out_flat = _fused_conv_matmul(
                p2, self.w2f.reshape(-1, self.out_planes), self.b2,
                relu=True, residual=sc_flat, out_dtype=jnp.float32,
            )

        out = out_flat.reshape(N, Ho, Wo, self.out_planes)
        return jnp.transpose(out, (0, 3, 1, 2)).astype(jnp.float32)

    # ---------------- reference (same bf16/f32 precision recipe) ----------------
    def reference(self, x_nchw):
        x = jnp.transpose(x_nchw, (0, 2, 3, 1)).astype(jnp.bfloat16)

        def conv(a, w, s, pad):
            return lax.conv_general_dilated(
                a.astype(jnp.bfloat16), w.astype(jnp.bfloat16), (s, s), pad,
                dimension_numbers=("NHWC", "HWIO", "NHWC"),
                preferred_element_type=jnp.float32,
            )

        out1 = jnp.maximum(
            conv(x, self.w1f, self.stride, ((1, 1), (1, 1))) + self.b1, 0.0
        ).astype(jnp.bfloat16)
        out2 = conv(out1, self.w2f, 1, ((1, 1), (1, 1))) + self.b2
        if self.has_proj:
            # Fused path keeps the projection contribution in f32.
            sc = conv(x, self.wscf, self.stride, "VALID") + self.bsc
        else:
            sc = x.astype(jnp.float32)
        out = jnp.maximum(out2 + sc, 0.0)
        return jnp.transpose(out, (0, 3, 1, 2)).astype(jnp.float32)


def _check(block, x, expected_shape):
    fwd = jax.jit(block.__call__)
    out = jax.block_until_ready(fwd(x))
    assert out.shape == expected_shape, out.shape
    ref = jax.block_until_ready(block.reference(x))
    if not jnp.allclose(out, ref, rtol=1e-2, atol=1e-2):
        err = float(jnp.max(jnp.abs(out - ref)))
        raise RuntimeError(
            f"Pallas BasicBlock output mismatch vs reference (max abs err {err})"
        )


if __name__ == "__main__":
    key = jax.random.PRNGKey(0)
    k_x1, k_p1, k_x2, k_p2 = jax.random.split(key, 4)

    # Projection-shortcut path: stride 2, channel expansion.
    N, Cin, H, W = 2, 4, 16, 16
    Cout, stride = 8, 2
    x1 = jax.random.normal(k_x1, (N, Cin, H, W), dtype=jnp.float32)
    block1 = BasicBlockPallas(k_p1, Cin, Cout, stride)
    _check(block1, x1, (N, Cout, H // stride, W // stride))

    # Identity-shortcut path: stride 1, same channel count.
    N2, C2, H2, W2 = 2, 8, 8, 8
    x2 = jax.random.normal(k_x2, (N2, C2, H2, W2), dtype=jnp.float32)
    block2 = BasicBlockPallas(k_p2, C2, C2, 1)
    _check(block2, x2, (N2, C2, H2, W2))

    print("KERNEL_OK")
</pallas_src>

<mosaic_0001>
module attributes {stable_mosaic.version = 11 : i64} {
  func.func @_fused_matmul_bn_kernel(%arg0: i32, %arg1: i32, %arg2: i32, %arg3: memref<128x128xbf16, #tpu.memory_space<vmem>>, %arg4: memref<128x128xbf16, #tpu.memory_space<vmem>>, %arg5: memref<1x128xf32, #tpu.memory_space<vmem>>, %arg6: memref<128x128xbf16, #tpu.memory_space<vmem>>, %arg7: memref<128x128xf32, #tpu.memory_space<vmem>>) attributes {dimension_semantics = [#tpu.dimension_semantics<parallel>, #tpu.dimension_semantics<parallel>, #tpu.dimension_semantics<arbitrary>], iteration_bounds = array<i64: 1, 1, 1>, scalar_prefetch = 0 : i64, scratch_operands = 1 : i64, tpu.core_type = #tpu.core_type<tc>, window_params = [{transform_indices = @transform_0, window_bounds = array<i64: 128, 128>}, {transform_indices = @transform_1, window_bounds = array<i64: 128, 128>}, {transform_indices = @transform_2, window_bounds = array<i64: 1, 128>}, {transform_indices = @transform_3, window_bounds = array<i64: 128, 128>}]} {
    %c0_i32 = arith.constant 0 : i32
    %0 = arith.cmpi eq, %arg2, %c0_i32 : i32
    %1 = arith.extui %0 : i1 to i32
    %c0_i32_0 = arith.constant 0 : i32
    %2 = arith.cmpi ne, %1, %c0_i32_0 : i32
    scf.if %2 {
      %cst_10 = arith.constant 0.000000e+00 : f32
      %12 = vector.broadcast %cst_10 : f32 to vector<128x128xf32>
      %c0_11 = arith.constant 0 : index
      %c0_12 = arith.constant 0 : index
      %13 = vector.load %arg7[%c0_11, %c0_12] : memref<128x128xf32, #tpu.memory_space<vmem>>, vector<128x128xf32>
      tpu.vector_store %arg7[%c0_11, %c0_12], %12 {strides = array<i32>} : memref<128x128xf32, #tpu.memory_space<vmem>>, vector<128x128xf32>,
    } else {
    }
    %c0 = arith.constant 0 : index
    %c0_1 = arith.constant 0 : index
    %3 = vector.load %arg7[%c0, %c0_1] : memref<128x128xf32, #tpu.memory_space<vmem>>, vector<128x128xf32>
    %c0_2 = arith.constant 0 : index
    %c0_3 = arith.constant 0 : index
    %4 = vector.load %arg3[%c0_2, %c0_3] : memref<128x128xbf16, #tpu.memory_space<vmem>>, vector<128x128xbf16>
    %c0_4 = arith.constant 0 : index
    %c0_5 = arith.constant 0 : index
    %5 = vector.load %arg4[%c0_4, %c0_5] : memref<128x128xbf16, #tpu.memory_space<vmem>>, vector<128x128xbf16>
    %cst = arith.constant dense<0.000000e+00> : vector<128x128xf32>
    %6 = tpu.matmul %4, %5, %cst {dimension_numbers = #tpu.dot_dimension_numbers<[1], [0], [0], [1], [0, 0, 1, 1], [], []>} : vector<128x128xbf16>, vector<128x128xbf16>, vector<128x128xf32> -> vector<128x128xf32>
    %7 = arith.addf %3, %6 : vector<128x128xf32>
    %c0_6 = arith.constant 0 : index
    %c0_7 = arith.constant 0 : index
    %8 = vector.load %arg7[%c0_6, %c0_7] : memref<128x128xf32, #tpu.memory_space<vmem>>, vector<128x128xf32>
    tpu.vector_store %arg7[%c0_6, %c0_7], %7 {strides = array<i32>} : memref<128x128xf32, #tpu.memory_space<vmem>>, vector<128x128xf32>,
    %c0_i32_8 = arith.constant 0 : i32
    %9 = arith.cmpi eq, %arg2, %c0_i32_8 : i32
    %10 = arith.extui %9 : i1 to i32
    %c0_i32_9 = arith.constant 0 : i32
    %11 = arith.cmpi ne, %10, %c0_i32_9 : i32
    scf.if %11 {
      %c0_10 = arith.constant 0 : index
      %c0_11 = arith.constant 0 : index
      %12 = vector.load %arg7[%c0_10, %c0_11] : memref<128x128xf32, #tpu.memory_space<vmem>>, vector<128x128xf32>
      %c0_12 = arith.constant 0 : index
      %c0_13 = arith.constant 0 : index
      %13 = vector.load %arg5[%c0_12, %c0_13] : memref<1x128xf32, #tpu.memory_space<vmem>>, vector<1x128xf32>
      %14 = vector.broadcast %13 : vector<1x128xf32> to vector<128x128xf32>
      %15 = arith.addf %12, %14 : vector<128x128xf32>
      %cst_14 = arith.constant 0.000000e+00 : f32
      %16 = vector.broadcast %cst_14 : f32 to vector<128x128xf32>
      %17 = arith.maximumf %15, %16 : vector<128x128xf32>
      %18 = arith.truncf %17 : vector<128x128xf32> to vector<128x128xbf16>
      %c0_15 = arith.constant 0 : index
      %c0_16 = arith.constant 0 : index
      %19 = vector.load %arg6[%c0_15, %c0_16] : memref<128x128xbf16, #tpu.memory_space<vmem>>, vector<128x128xbf16>
      tpu.vector_store %arg6[%c0_15, %c0_16], %18 {strides = array<i32>} : memref<128x128xbf16, #tpu.memory_space<vmem>>, vector<128x128xbf16>,
    } else {
    }
    return
  }
  func.func @transform_0(%arg0: i32, %arg1: i32, %arg2: i32) -> (i32, i32) {
    %c0_i32 = arith.constant 0 : i32
    return %arg0, %arg2 : i32, i32
  }
  func.func @transform_1(%arg0: i32, %arg1: i32, %arg2: i32) -> (i32, i32) {
    %c0_i32 = arith.constant 0 : i32
    return %arg2, %arg1 : i32, i32
  }
  func.func @transform_2(%arg0: i32, %arg1: i32, %arg2: i32) -> (i32, i32) {
    %c0_i32 = arith.constant 0 : i32
    %c0_i32_0 = arith.constant 0 : i32
    return %c0_i32, %arg1 : i32, i32
  }
  func.func @transform_3(%arg0: i32, %arg1: i32, %arg2: i32) -> (i32, i32) {
    %c0_i32 = arith.constant 0 : i32
    return %arg0, %arg1 : i32, i32
  }
}

module attributes {stable_mosaic.version = 11 : i64} {
  func.func @_fused_matmul_bn_kernel(%arg0: i32, %arg1: i32, %arg2: i32, %arg3: memref<128x128xbf16, #tpu.memory_space<vmem>>, %arg4: memref<128x128xbf16, #tpu.memory_space<vmem>>, %arg5: memref<1x128xf32, #tpu.memory_space<vmem>>, %arg6: memref<128x128xf32, #tpu.memory_space<vmem>>, %arg7: memref<128x128xf32, #tpu.memory_space<vmem>>) attributes {dimension_semantics = [#tpu.dimension_semantics<parallel>, #tpu.dimension_semantics<parallel>, #tpu.dimension_semantics<arbitrary>], iteration_bounds = array<i64: 1, 1, 1>, scalar_prefetch = 0 : i64, scratch_operands = 1 : i64, tpu.core_type = #tpu.core_type<tc>, window_params = [{transform_indices = @transform_0, window_bounds = array<i64: 128, 128>}, {transform_indices = @transform_1, window_bounds = array<i64: 128, 128>}, {transform_indices = @transform_2, window_bounds = array<i64: 1, 128>}, {transform_indices = @transform_3, window_bounds = array<i64: 128, 128>}]} {
    %c0_i32 = arith.constant 0 : i32
    %0 = arith.cmpi eq, %arg2, %c0_i32 : i32
    %1 = arith.extui %0 : i1 to i32
    %c0_i32_0 = arith.constant 0 : i32
    %2 = arith.cmpi ne, %1, %c0_i32_0 : i32
    scf.if %2 {
      %cst_10 = arith.constant 0.000000e+00 : f32
      %12 = vector.broadcast %cst_10 : f32 to vector<128x128xf32>
      %c0_11 = arith.constant 0 : index
      %c0_12 = arith.constant 0 : index
      %13 = vector.load %arg7[%c0_11, %c0_12] : memref<128x128xf32, #tpu.memory_space<vmem>>, vector<128x128xf32>
      tpu.vector_store %arg7[%c0_11, %c0_12], %12 {strides = array<i32>} : memref<128x128xf32, #tpu.memory_space<vmem>>, vector<128x128xf32>,
    } else {
    }
    %c0 = arith.constant 0 : index
    %c0_1 = arith.constant 0 : index
    %3 = vector.load %arg7[%c0, %c0_1] : memref<128x128xf32, #tpu.memory_space<vmem>>, vector<128x128xf32>
    %c0_2 = arith.constant 0 : index
    %c0_3 = arith.constant 0 : index
    %4 = vector.load %arg3[%c0_2, %c0_3] : memref<128x128xbf16, #tpu.memory_space<vmem>>, vector<128x128xbf16>
    %c0_4 = arith.constant 0 : index
    %c0_5 = arith.constant 0 : index
    %5 = vector.load %arg4[%c0_4, %c0_5] : memref<128x128xbf16, #tpu.memory_space<vmem>>, vector<128x128xbf16>
    %cst = arith.constant dense<0.000000e+00> : vector<128x128xf32>
    %6 = tpu.matmul %4, %5, %cst {dimension_numbers = #tpu.dot_dimension_numbers<[1], [0], [0], [1], [0, 0, 1, 1], [], []>} : vector<128x128xbf16>, vector<128x128xbf16>, vector<128x128xf32> -> vector<128x128xf32>
    %7 = arith.addf %3, %6 : vector<128x128xf32>
    %c0_6 = arith.constant 0 : index
    %c0_7 = arith.constant 0 : index
    %8 = vector.load %arg7[%c0_6, %c0_7] : memref<128x128xf32, #tpu.memory_space<vmem>>, vector<128x128xf32>
    tpu.vector_store %arg7[%c0_6, %c0_7], %7 {strides = array<i32>} : memref<128x128xf32, #tpu.memory_space<vmem>>, vector<128x128xf32>,
    %c0_i32_8 = arith.constant 0 : i32
    %9 = arith.cmpi eq, %arg2, %c0_i32_8 : i32
    %10 = arith.extui %9 : i1 to i32
    %c0_i32_9 = arith.constant 0 : i32
    %11 = arith.cmpi ne, %10, %c0_i32_9 : i32
    scf.if %11 {
      %c0_10 = arith.constant 0 : index
      %c0_11 = arith.constant 0 : index
      %12 = vector.load %arg7[%c0_10, %c0_11] : memref<128x128xf32, #tpu.memory_space<vmem>>, vector<128x128xf32>
      %c0_12 = arith.constant 0 : index
      %c0_13 = arith.constant 0 : index
      %13 = vector.load %arg5[%c0_12, %c0_13] : memref<1x128xf32, #tpu.memory_space<vmem>>, vector<1x128xf32>
      %14 = vector.broadcast %13 : vector<1x128xf32> to vector<128x128xf32>
      %15 = arith.addf %12, %14 : vector<128x128xf32>
      %cst_14 = arith.constant 0.000000e+00 : f32
      %16 = vector.broadcast %cst_14 : f32 to vector<128x128xf32>
      %17 = arith.maximumf %15, %16 : vector<128x128xf32>
      %c0_15 = arith.constant 0 : index
      %c0_16 = arith.constant 0 : index
      %18 = vector.load %arg6[%c0_15, %c0_16] : memref<128x128xf32, #tpu.memory_space<vmem>>, vector<128x128xf32>
      tpu.vector_store %arg6[%c0_15, %c0_16], %17 {strides = array<i32>} : memref<128x128xf32, #tpu.memory_space<vmem>>, vector<128x128xf32>,
    } else {
    }
    return
  }
  func.func @transform_0(%arg0: i32, %arg1: i32, %arg2: i32) -> (i32, i32) {
    %c0_i32 = arith.constant 0 : i32
    return %arg0, %arg2 : i32, i32
  }
  func.func @transform_1(%arg0: i32, %arg1: i32, %arg2: i32) -> (i32, i32) {
    %c0_i32 = arith.constant 0 : i32
    return %arg2, %arg1 : i32, i32
  }
  func.func @transform_2(%arg0: i32, %arg1: i32, %arg2: i32) -> (i32, i32) {
    %c0_i32 = arith.constant 0 : i32
    %c0_i32_0 = arith.constant 0 : i32
    return %c0_i32, %arg1 : i32, i32
  }
  func.func @transform_3(%arg0: i32, %arg1: i32, %arg2: i32) -> (i32, i32) {
    %c0_i32 = arith.constant 0 : i32
    return %arg0, %arg1 : i32, i32
  }
}

</mosaic_0001>

<bundles_post_ra>
// kernel: a_call__.2
= control target key start
LH: loop header
LB: loop body
LE: loop exit
PB: predicated region body
PF: predicated region fallthrough
CT: control target
= control target key end

     0   :  { %s721_s1 = inlined_call_operand.vmem [shape: bf16[128,128], index: 1, kind: input, shape index: {}]   ;;  %s722_s0 = inlined_call_operand.vmem [shape: bf16[128,128], index: 0, kind: input, shape index: {}]   ;;  %s723_s2 = inlined_call_operand.vmem [shape: f32[1,128], index: 2, kind: input, shape index: {}]   ;;  %s724_s3 = inlined_call_operand.vmem [shape: bf16[128,128], index: 3, kind: output, shape index: {}]  }
   0x1   :  { %v610_v0 = vld [vmem:[%s721_s1] sm:$0xff]   ;;  %v611_v1 = vld [vmem:[%s721_s1 + $0x8] sm:$0xff]   ;;  %v612_v2 = vld [vmem:[%s721_s1 + $0x10] sm:$0xff]  }
   0x2   :  { %562 = vmatprep.subr.bf16.mxu0 %v610_v0  ;;  %594 = vmatprep.subr.bf16.mxu1 %v610_v0  ;;  %v613_v3 = vld [vmem:[%s721_s1 + $0x18] sm:$0xff]   ;;  %v618_v4 = vld [vmem:[%s722_s0] sm:$0xff]   ;;  %v615_v7 = vld [vmem:[%s721_s1 + $0x28] sm:$0xff]  }
   0x3   :  { %563 = vmatpush3.bf16.msra.mxu0 %v610_v0  ;;  %602 = vmatpush3.bf16.msra.mxu1 %v610_v0  ;;  %v619_v5 = vld [vmem:[%s722_s0 + $0x20] sm:$0xff]   ;;  %v616_v8 = vld [vmem:[%s721_s1 + $0x30] sm:$0xff]   ;;  %v617_v9 = vld [vmem:[%s721_s1 + $0x38] sm:$0xff]  }
   0x4   :  { %564 = vmatprep.subr.bf16.mxu0 %v611_v1  ;;  %595 = vmatprep.subr.bf16.mxu1 %v611_v1  ;;  %v614_v6 = vld [vmem:[%s721_s1 + $0x20] sm:$0xff]   ;;  %v620_v10 = vld [vmem:[%s722_s0 + $0x8] sm:$0xff]   ;;  %v622_v12 = vld [vmem:[%s722_s0 + $0x10] sm:$0xff]  }
   0x5   :  { %578 = vmatprep.mubr.bf16.mxu0 %v618_v4  ;;  %586 = vmatprep.mubr.bf16.mxu1 %v619_v5  ;;  %v621_v11 = vld [vmem:[%s722_s0 + $0x28] sm:$0xff]   ;;  %v623_v13 = vld [vmem:[%s722_s0 + $0x30] sm:$0xff]   ;;  %v624_v14 = vld [vmem:[%s722_s0 + $0x18] sm:$0xff]  }
   0x6   :  { %v625_v15 = vld [vmem:[%s722_s0 + $0x38] sm:$0xff]   ;;  %v466_v16 = vld [vmem:[%s723_s2] ss:$0 sm:$0xff] }
   0x7   :  { %565 = vmatpush3.bf16.msra.mxu0 %v611_v1  ;;  %603 = vmatpush3.bf16.msra.mxu1 %v611_v1 }
   0x8   :  { %566 = vmatprep.subr.bf16.mxu0 %v612_v2  ;;  %596 = vmatprep.subr.bf16.mxu1 %v612_v2 }
   0xb   :  { %567 = vmatpush3.bf16.msra.mxu0 %v612_v2  ;;  %604 = vmatpush3.bf16.msra.mxu1 %v612_v2 }
   0xc   :  { %568 = vmatprep.subr.bf16.mxu0 %v613_v3  ;;  %597 = vmatprep.subr.bf16.mxu1 %v613_v3 }
   0xf   :  { %569 = vmatpush3.bf16.msra.mxu0 %v613_v3  ;;  %605 = vmatpush3.bf16.msra.mxu1 %v613_v3 }
  0x10   :  { %570 = vmatprep.subr.bf16.mxu0 %v614_v6  ;;  %598 = vmatprep.subr.bf16.mxu1 %v614_v6 }
  0x13   :  { %571 = vmatpush3.bf16.msra.mxu0 %v614_v6  ;;  %606 = vmatpush3.bf16.msra.mxu1 %v614_v6 }
  0x14   :  { %572 = vmatprep.subr.bf16.mxu0 %v615_v7  ;;  %599 = vmatprep.subr.bf16.mxu1 %v615_v7 }
  0x17   :  { %573 = vmatpush3.bf16.msra.mxu0 %v615_v7  ;;  %607 = vmatpush3.bf16.msra.mxu1 %v615_v7 }
  0x18   :  { %574 = vmatprep.subr.bf16.mxu0 %v616_v8  ;;  %600 = vmatprep.subr.bf16.mxu1 %v616_v8 }
  0x1b   :  { %575 = vmatpush3.bf16.msra.mxu0 %v616_v8  ;;  %608 = vmatpush3.bf16.msra.mxu1 %v616_v8 }
  0x1c   :  { %576 = vmatprep.subr.bf16.mxu0 %v617_v9  ;;  %601 = vmatprep.subr.bf16.mxu1 %v617_v9 }
  0x1f   :  { %577 = vmatpush3.bf16.msra.mxu0 %v617_v9  ;;  %609 = vmatpush3.bf16.msra.mxu1 %v617_v9 }
  0x22   :  { %579 = vmatmul.mubr.bf16.vlgmr.msra.gmra.mrb[0].mxu0 %v620_v10  ;;  %587 = vmatmul.mubr.bf16.vlgmr.msra.gmra.mrb[0].mxu1 %v621_v11 }
  0x23   :  { %582 = vmatprep.mubr.bf16.mxu0 %v622_v12  ;;  %590 = vmatprep.mubr.bf16.mxu1 %v623_v13 }
  0x2a   :  { %583 = vmatmul.mubr.bf16.gmra.mrb[4].mxu0 %v624_v14  ;;  %591 = vmatmul.mubr.bf16.gmra.mrb[4].mxu1 %v625_v15 }
  0xf5   :  { %v580_v17 = vpop.f32.mrb[0].mxu0  ;;  %v588_v18 = vpop.f32.mrb[0].mxu1 }
  0xf6   :  { %v336_v19 = vadd.f32 %v580_v17, %v466_v16  ;;  %v344_v20 = vadd.f32 %v588_v18, %v466_v16  ;;  %v213_v21 = vpop.f32.mrb[1].mxu0  ;;  %v245_v22 = vpop.f32.mrb[1].mxu1 }
  0xf7   :  { %v334_v23 = vadd.f32 %v466_v16, %v213_v21  ;;  %v342_v24 = vadd.f32 %v466_v16, %v245_v22  ;;  %v581_v25 = vpop.f32.mrb[2].mxu0  ;;  %v589_v26 = vpop.f32.mrb[2].mxu1 }
  0xf8   :  { %v337_v27 = vadd.f32 %v581_v25, %v466_v16  ;;  %v345_v28 = vadd.f32 %v589_v26, %v466_v16  ;;  %v216_v29 = vpop.f32.mrb[3].mxu0  ;;  %v248_v30 = vpop.f32.mrb[3].mxu1  ;;  %v352_v33 = vmax.f32 %v336_v19, 0.0  ;;  %v360_v34 = vmax.f32 %v344_v20, 0.0 }
  0xf9   :  { %v335_v31 = vadd.f32 %v466_v16, %v216_v29  ;;  %v343_v32 = vadd.f32 %v466_v16, %v248_v30  ;;  %v350_v37 = vmax.f32 %v334_v23, 0.0  ;;  %v358_v38 = vmax.f32 %v342_v24, 0.0 }
  0xfa   :  { %v353_v35 = vmax.f32 %v337_v27, 0.0  ;;  %v361_v36 = vmax.f32 %v345_v28, 0.0 }
  0xfb   :  { %v351_v39 = vmax.f32 %v335_v31, 0.0  ;;  %v359_v40 = vmax.f32 %v343_v32, 0.0 }
  0xfc   :  { %v507_v41 = vpack.c.bf16 %v353_v35, %v352_v33  ;;  %v527_v42 = vpack.c.bf16 %v361_v36, %v360_v34 }
  0xfd   :  { %v502_v43 = vpack.c.bf16 %v351_v39, %v350_v37  ;;  %v522_v44 = vpack.c.bf16 %v359_v40, %v358_v38  ;;  %v584_v45 = vpop.f32.mrb[4].mxu0  ;;  %v592_v46 = vpop.f32.mrb[4].mxu1 }
  0xfe   :  { %539 = vst [vmem:[%s724_s3 + $0x8] sm:$0xff] %v507_v41   ;;  %543 = vst [vmem:[%s724_s3 + $0x28] sm:$0xff] %v527_v42   ;;  %v340_v47 = vadd.f32 %v584_v45, %v466_v16  ;;  %v348_v48 = vadd.f32 %v592_v46, %v466_v16  ;;  %v229_v49 = vpop.f32.mrb[5].mxu0  ;;  %v261_v50 = vpop.f32.mrb[5].mxu1 }
  0xff   :  { %503 = vst [vmem:[%s724_s3] sm:$0xff] %v502_v43   ;;  %542 = vst [vmem:[%s724_s3 + $0x20] sm:$0xff] %v522_v44   ;;  %v338_v51 = vadd.f32 %v466_v16, %v229_v49  ;;  %v346_v52 = vadd.f32 %v466_v16, %v261_v50  ;;  %v585_v53 = vpop.f32.mrb[6].mxu0  ;;  %v593_v54 = vpop.f32.mrb[6].mxu1 }
 0x100   :  { %v341_v55 = vadd.f32 %v585_v53, %v466_v16  ;;  %v349_v56 = vadd.f32 %v593_v54, %v466_v16  ;;  %v232_v57 = vpop.f32.mrb[7].mxu0  ;;  %v264_v58 = vpop.f32.mrb[7].mxu1  ;;  %v356_v61 = vmax.f32 %v340_v47, 0.0  ;;  %v364_v62 = vmax.f32 %v348_v48, 0.0 }
 0x101   :  { %v339_v59 = vadd.f32 %v466_v16, %v232_v57  ;;  %v347_v60 = vadd.f32 %v466_v16, %v264_v58  ;;  %v354_v1 = vmax.f32 %v338_v51, 0.0  ;;  %v362_v2 = vmax.f32 %v346_v52, 0.0 }
 0x102   :  { %v357_v63 = vmax.f32 %v341_v55, 0.0  ;;  %v365_v0 = vmax.f32 %v349_v56, 0.0 }
 0x103   :  { %v355_v3 = vmax.f32 %v339_v59, 0.0  ;;  %v363_v4 = vmax.f32 %v347_v60, 0.0 }
 0x104   :  { %v517_v5 = vpack.c.bf16 %v357_v63, %v356_v61  ;;  %v537_v6 = vpack.c.bf16 %v365_v0, %v364_v62 }
 0x105   :  { %v512_v7 = vpack.c.bf16 %v355_v3, %v354_v1  ;;  %v532_v8 = vpack.c.bf16 %v363_v4, %v362_v2 }
 0x106   :  { %541 = vst [vmem:[%s724_s3 + $0x18] sm:$0xff] %v517_v5   ;;  %545 = vst [vmem:[%s724_s3 + $0x38] sm:$0xff] %v537_v6  }
 0x107   :  { %540 = vst [vmem:[%s724_s3 + $0x10] sm:$0xff] %v512_v7   ;;  %544 = vst [vmem:[%s724_s3 + $0x30] sm:$0xff] %v532_v8  }

// kernel: a_call__.3
= control target key start
LH: loop header
LB: loop body
LE: loop exit
PB: predicated region body
PF: predicated region fallthrough
CT: control target
= control target key end

     0   :  { %s602_s1 = inlined_call_operand.vmem [shape: bf16[128,128], index: 1, kind: input, shape index: {}]   ;;  %s603_s0 = inlined_call_operand.vmem [shape: bf16[128,128], index: 0, kind: input, shape index: {}]   ;;  %s604_s2 = inlined_call_operand.vmem [shape: f32[1,128], index: 2, kind: input, shape index: {}]   ;;  %s605_s3 = inlined_call_operand.vmem [shape: f32[128,128], index: 3, kind: output, shape index: {}]  }
   0x1   :  { %v467_v0 = vld [vmem:[%s602_s1] sm:$0xff]   ;;  %v468_v1 = vld [vmem:[%s602_s1 + $0x8] sm:$0xff]   ;;  %v469_v2 = vld [vmem:[%s602_s1 + $0x10] sm:$0xff]  }
   0x2   :  { %419 = vmatprep.subr.bf16.mxu0 %v467_v0  ;;  %451 = vmatprep.subr.bf16.mxu1 %v467_v0  ;;  %v470_v3 = vld [vmem:[%s602_s1 + $0x18] sm:$0xff]   ;;  %v475_v4 = vld [vmem:[%s603_s0] sm:$0xff]   ;;  %v472_v7 = vld [vmem:[%s602_s1 + $0x28] sm:$0xff]  }
   0x3   :  { %420 = vmatpush3.bf16.msra.mxu0 %v467_v0  ;;  %459 = vmatpush3.bf16.msra.mxu1 %v467_v0  ;;  %v476_v5 = vld [vmem:[%s603_s0 + $0x20] sm:$0xff]   ;;  %v473_v8 = vld [vmem:[%s602_s1 + $0x30] sm:$0xff]   ;;  %v474_v9 = vld [vmem:[%s602_s1 + $0x38] sm:$0xff]  }
   0x4   :  { %421 = vmatprep.subr.bf16.mxu0 %v468_v1  ;;  %452 = vmatprep.subr.bf16.mxu1 %v468_v1  ;;  %v471_v6 = vld [vmem:[%s602_s1 + $0x20] sm:$0xff]   ;;  %v477_v10 = vld [vmem:[%s603_s0 + $0x8] sm:$0xff]   ;;  %v479_v12 = vld [vmem:[%s603_s0 + $0x10] sm:$0xff]  }
   0x5   :  { %435 = vmatprep.mubr.bf16.mxu0 %v475_v4  ;;  %443 = vmatprep.mubr.bf16.mxu1 %v476_v5  ;;  %v478_v11 = vld [vmem:[%s603_s0 + $0x28] sm:$0xff]   ;;  %v480_v13 = vld [vmem:[%s603_s0 + $0x30] sm:$0xff]   ;;  %v481_v14 = vld [vmem:[%s603_s0 + $0x18] sm:$0xff]  }
   0x6   :  { %v482_v15 = vld [vmem:[%s603_s0 + $0x38] sm:$0xff]   ;;  %v402_v16 = vld [vmem:[%s604_s2] ss:$0 sm:$0xff] }
   0x7   :  { %422 = vmatpush3.bf16.msra.mxu0 %v468_v1  ;;  %460 = vmatpush3.bf16.msra.mxu1 %v468_v1 }
   0x8   :  { %423 = vmatprep.subr.bf16.mxu0 %v469_v2  ;;  %453 = vmatprep.subr.bf16.mxu1 %v469_v2 }
   0xb   :  { %424 = vmatpush3.bf16.msra.mxu0 %v469_v2  ;;  %461 = vmatpush3.bf16.msra.mxu1 %v469_v2 }
   0xc   :  { %425 = vmatprep.subr.bf16.mxu0 %v470_v3  ;;  %454 = vmatprep.subr.bf16.mxu1 %v470_v3 }
   0xf   :  { %426 = vmatpush3.bf16.msra.mxu0 %v470_v3  ;;  %462 = vmatpush3.bf16.msra.mxu1 %v470_v3 }
  0x10   :  { %427 = vmatprep.subr.bf16.mxu0 %v471_v6  ;;  %455 = vmatprep.subr.bf16.mxu1 %v471_v6 }
  0x13   :  { %428 = vmatpush3.bf16.msra.mxu0 %v471_v6  ;;  %463 = vmatpush3.bf16.msra.mxu1 %v471_v6 }
  0x14   :  { %429 = vmatprep.subr.bf16.mxu0 %v472_v7  ;;  %456 = vmatprep.subr.bf16.mxu1 %v472_v7 }
  0x17   :  { %430 = vmatpush3.bf16.msra.mxu0 %v472_v7  ;;  %464 = vmatpush3.bf16.msra.mxu1 %v472_v7 }
  0x18   :  { %431 = vmatprep.subr.bf16.mxu0 %v473_v8  ;;  %457 = vmatprep.subr.bf16.mxu1 %v473_v8 }
  0x1b   :  { %432 = vmatpush3.bf16.msra.mxu0 %v473_v8  ;;  %465 = vmatpush3.bf16.msra.mxu1 %v473_v8 }
  0x1c   :  { %433 = vmatprep.subr.bf16.mxu0 %v474_v9  ;;  %458 = vmatprep.subr.bf16.mxu1 %v474_v9 }
  0x1f   :  { %434 = vmatpush3.bf16.msra.mxu0 %v474_v9  ;;  %466 = vmatpush3.bf16.msra.mxu1 %v474_v9 }
  0x22   :  { %436 = vmatmul.mubr.bf16.vlgmr.msra.gmra.mrb[0].mxu0 %v477_v10  ;;  %444 = vmatmul.mubr.bf16.vlgmr.msra.gmra.mrb[0].mxu1 %v478_v11 }
  0x23   :  { %439 = vmatprep.mubr.bf16.mxu0 %v479_v12  ;;  %447 = vmatprep.mubr.bf16.mxu1 %v480_v13 }
  0x2a   :  { %440 = vmatmul.mubr.bf16.gmra.mrb[4].mxu0 %v481_v14  ;;  %448 = vmatmul.mubr.bf16.gmra.mrb[4].mxu1 %v482_v15 }
  0xf5   :  { %v437_v17 = vpop.f32.mrb[0].mxu0  ;;  %v445_v18 = vpop.f32.mrb[0].mxu1 }
  0xf6   :  { %v336_v19 = vadd.f32 %v437_v17, %v402_v16  ;;  %v344_v20 = vadd.f32 %v445_v18, %v402_v16  ;;  %v213_v21 = vpop.f32.mrb[1].mxu0  ;;  %v245_v22 = vpop.f32.mrb[1].mxu1 }
  0xf7   :  { %v334_v23 = vadd.f32 %v402_v16, %v213_v21  ;;  %v342_v24 = vadd.f32 %v402_v16, %v245_v22  ;;  %v438_v25 = vpop.f32.mrb[2].mxu0  ;;  %v446_v26 = vpop.f32.mrb[2].mxu1 }
  0xf8   :  { %v352_v27 = vmax.f32 %v336_v19, 0.0  ;;  %v360_v28 = vmax.f32 %v344_v20, 0.0  ;;  %v337_v29 = vadd.f32 %v438_v25, %v402_v16  ;;  %v345_v30 = vadd.f32 %v446_v26, %v402_v16  ;;  %v216_v31 = vpop.f32.mrb[3].mxu0  ;;  %v248_v32 = vpop.f32.mrb[3].mxu1 }
  0xf9   :  { %v350_v33 = vmax.f32 %v334_v23, 0.0  ;;  %v358_v34 = vmax.f32 %v342_v24, 0.0  ;;  %v335_v35 = vadd.f32 %v402_v16, %v216_v31  ;;  %v343_v36 = vadd.f32 %v402_v16, %v248_v32 }
  0xfa   :  { %368 = vst [vmem:[%s605_s3 + $0x10] sm:$0xff] %v352_v27  ;;  %376 = vst [vmem:[%s605_s3 + $0x50] sm:$0xff] %v360_v28  ;;  %v353_v37 = vmax.f32 %v337_v29, 0.0  ;;  %v361_v38 = vmax.f32 %v345_v30, 0.0 }
  0xfb   :  { %366 = vst [vmem:[%s605_s3] sm:$0xff] %v350_v33  ;;  %374 = vst [vmem:[%s605_s3 + $0x40] sm:$0xff] %v358_v34  ;;  %v351_v39 = vmax.f32 %v335_v35, 0.0  ;;  %v359_v40 = vmax.f32 %v343_v36, 0.0 }
  0xfc   :  { %369 = vst [vmem:[%s605_s3 + $0x18] sm:$0xff] %v353_v37  ;;  %377 = vst [vmem:[%s605_s3 + $0x58] sm:$0xff] %v361_v38 }
  0xfd   :  { %367 = vst [vmem:[%s605_s3 + $0x8] sm:$0xff] %v351_v39  ;;  %375 = vst [vmem:[%s605_s3 + $0x48] sm:$0xff] %v359_v40  ;;  %v441_v41 = vpop.f32.mrb[4].mxu0  ;;  %v449_v42 = vpop.f32.mrb[4].mxu1 }
  0xfe   :  { %v340_v43 = vadd.f32 %v441_v41, %v402_v16  ;;  %v348_v44 = vadd.f32 %v449_v42, %v402_v16  ;;  %v229_v45 = vpop.f32.mrb[5].mxu0  ;;  %v261_v46 = vpop.f32.mrb[5].mxu1 }
  0xff   :  { %v338_v47 = vadd.f32 %v402_v16, %v229_v45  ;;  %v346_v48 = vadd.f32 %v402_v16, %v261_v46  ;;  %v442_v49 = vpop.f32.mrb[6].mxu0  ;;  %v450_v50 = vpop.f32.mrb[6].mxu1 }
 0x100   :  { %v356_v51 = vmax.f32 %v340_v43, 0.0  ;;  %v364_v52 = vmax.f32 %v348_v44, 0.0  ;;  %v341_v53 = vadd.f32 %v442_v49, %v402_v16  ;;  %v349_v54 = vadd.f32 %v450_v50, %v402_v16  ;;  %v232_v55 = vpop.f32.mrb[7].mxu0  ;;  %v264_v56 = vpop.f32.mrb[7].mxu1 }
 0x101   :  { %v354_v57 = vmax.f32 %v338_v47, 0.0  ;;  %v362_v58 = vmax.f32 %v346_v48, 0.0  ;;  %v339_v59 = vadd.f32 %v402_v16, %v232_v55  ;;  %v347_v60 = vadd.f32 %v402_v16, %v264_v56 }
 0x102   :  { %372 = vst [vmem:[%s605_s3 + $0x30] sm:$0xff] %v356_v51  ;;  %380 = vst [vmem:[%s605_s3 + $0x70] sm:$0xff] %v364_v52  ;;  %v357_v61 = vmax.f32 %v341_v53, 0.0  ;;  %v365_v62 = vmax.f32 %v349_v54, 0.0 }
 0x103   :  { %370 = vst [vmem:[%s605_s3 + $0x20] sm:$0xff] %v354_v57  ;;  %378 = vst [vmem:[%s605_s3 + $0x60] sm:$0xff] %v362_v58  ;;  %v355_v63 = vmax.f32 %v339_v59, 0.0  ;;  %v363_v0 = vmax.f32 %v347_v60, 0.0 }
 0x104   :  { %373 = vst [vmem:[%s605_s3 + $0x38] sm:$0xff] %v357_v61  ;;  %381 = vst [vmem:[%s605_s3 + $0x78] sm:$0xff] %v365_v62 }
 0x105   :  { %371 = vst [vmem:[%s605_s3 + $0x28] sm:$0xff] %v355_v63  ;;  %379 = vst [vmem:[%s605_s3 + $0x68] sm:$0xff] %v363_v0 }

</bundles_post_ra>
